<compile_context>
chip_gen: v7x
topology: tpu7x:2x2x1
jax: 0.10.0
libtpu: 0.0.40
codegen_flags: <defaults>
</compile_context>

<pallas_src>
import functools

import jax
import jax.numpy as jnp
from jax.experimental import pallas as pl
from jax.experimental.pallas import tpu as pltpu

LANE = 128


def _round_up(n, m):
    return ((n + m - 1) // m) * m


def _compiler_params(vmem_estimate_bytes):
    kwargs = dict(dimension_semantics=("parallel",))
    # Raise the scoped-VMEM limit only when the tile plan needs it
    # (default scoped limit is 32 MiB; v7x physical VMEM is 64 MiB per core).
    if vmem_estimate_bytes > 30 * 1024 * 1024:
        kwargs["vmem_limit_bytes"] = min(int(vmem_estimate_bytes * 5 // 4),
                                         60 * 1024 * 1024)
    return pltpu.CompilerParams(**kwargs)


# --------------------------------------------------------------------------
# Path 1: small tables — VMEM-resident fused block-diagonal lookup.
# --------------------------------------------------------------------------
def _fused_kernel(idx_ref,    # VMEM (tm, 3) int32  [x | l+WL | r+WL+FL]
                  tab_ref,    # VMEM (V, D_pad) f32 block-diag [Wv ⊕ pf1 ⊕ pf2]
                  out_ref):   # VMEM (tm, D_pad) f32
    tm = idx_ref.shape[0]
    v = tab_ref.shape[0]
    idx = idx_ref[...]
    iota = jax.lax.broadcasted_iota(jnp.int32, (tm, v), 1)
    # The three index ranges are disjoint -> OR-ed one-hot is exact; one MXU
    # matmul produces the whole [x_emb | l_emb | r_emb | 0-pad] row.
    onehot = ((idx[:, 0:1] == iota) | (idx[:, 1:2] == iota)
              | (idx[:, 2:3] == iota)).astype(jnp.float32)
    out_ref[...] = jnp.dot(onehot, tab_ref[...],
                           preferred_element_type=jnp.float32
                           ).astype(out_ref.dtype)


# --------------------------------------------------------------------------
# Path 2: large vocab — double-buffered HBM row gather + fused dist lookup.
# --------------------------------------------------------------------------
def _gather_kernel(xidx_ref,   # SMEM (n_pad,) int32 (scalar prefetch)
                   lr_ref,     # VMEM (tm, 2) int32  [ldist | rdist+FL]
                   wv_hbm,     # ANY/HBM (WL, WS) native dtype
                   lrtab_ref,  # VMEM (FL+FL2, D_pad-WS) f32 col-padded table
                   out_ref,    # VMEM (tm, D_pad) f32
                   xbuf,       # VMEM (2, tm, WS) native dtype (double buffer)
                   sem):       # DMA semaphores (2,) — one per buffer slot
    tm = xbuf.shape[1]
    i = pl.program_id(0)
    nsteps = pl.num_programs(0)
    slot = i % 2

    def issue(tile, slot_):
        base = tile * tm

        @pl.loop(0, tm)
        def _(t):
            row = xidx_ref[base + t]
            pltpu.make_async_copy(wv_hbm.at[pl.ds(row, 1)],
                                  xbuf.at[slot_, pl.ds(t, 1)],
                                  sem.at[slot_]).start()

    # Prime: on the first step gather this tile's rows into slot 0.
    @pl.when(i == 0)
    def _():
        issue(0, 0)

    # Cross-step prefetch: issue tile i+1's gather into the other slot BEFORE
    # waiting on tile i's, so the HBM gather latency hides behind compute.
    @pl.when(i + 1 < nsteps)
    def _():
        issue(i + 1, (i + 1) % 2)

    # Distance lookup overlaps with the in-flight gather DMAs: one one-hot
    # matmul against the column-padded block-diagonal [pf1 ⊕ pf2] table
    # directly produces the (tm, D_pad - WS) tail of the output row.
    v = lrtab_ref.shape[0]
    lr = lr_ref[...]
    iota = jax.lax.broadcasted_iota(jnp.int32, (tm, v), 1)
    onehot = ((lr[:, 0:1] == iota) | (lr[:, 1:2] == iota)).astype(jnp.float32)
    lr_emb = jnp.dot(onehot, lrtab_ref[...], preferred_element_type=jnp.float32)

    # Wait for this tile's word rows by re-issuing the *identical* descriptors
    # that were started (same src row / dst slice / slot semaphore), so the
    # semaphore accounting is balanced by construction.
    base = i * tm

    @pl.loop(0, tm)
    def _(t):
        row = xidx_ref[base + t]
        pltpu.make_async_copy(wv_hbm.at[pl.ds(row, 1)],
                              xbuf.at[slot, pl.ds(t, 1)],
                              sem.at[slot]).wait()

    word = xbuf[slot].astype(jnp.float32)                  # (tm, WS)
    # Single lane-dense store of [x_emb | l_emb | r_emb | 0-pad].
    out_ref[...] = jnp.concatenate([word, lr_emb], axis=-1).astype(out_ref.dtype)


# --------------------------------------------------------------------------
# Wrapper
# --------------------------------------------------------------------------
@functools.partial(jax.jit, static_argnames=("block_rows", "force_hbm_gather"))
def get_embeddings(x, ldist, rdist, Wv, pf1, pf2, *,
                   block_rows=None, force_hbm_gather=False):
    """Pallas equivalent of getEmbeddings.forward. Returns (B, 1, S, D) f32."""
    B, S = x.shape
    WL, WS = Wv.shape
    FL, FS = pf1.shape
    FL2, FS2 = pf2.shape
    D = WS + FS + FS2
    D_pad = _round_up(D, LANE)          # lane-dense output (unmasked stores)
    N = B * S

    # ---- wrapper-side layout plumbing (free) ------------------------------
    # NOTE: PyTorch nn.Embedding raises on out-of-range indices; we clamp
    # (jnp.take-style) so bad indices stay in-bounds instead.
    x_idx = jnp.clip(x.reshape(N).astype(jnp.int32), 0, WL - 1)
    l_idx = jnp.clip(ldist.reshape(N).astype(jnp.int32), 0, FL - 1)
    r_idx = jnp.clip(rdist.reshape(N).astype(jnp.int32), 0, FL2 - 1)

    if block_rows is None:
        block_rows = 512 if N >= 512 else _round_up(N, 8)
    tm = _round_up(block_rows, 8)
    n_pad = _round_up(N, tm)
    pad = n_pad - N
    if pad:
        zero = jnp.zeros((pad,), jnp.int32)
        x_idx = jnp.concatenate([x_idx, zero])
        l_idx = jnp.concatenate([l_idx, zero])
        r_idx = jnp.concatenate([r_idx, zero])
    grid = (n_pad // tm,)

    # Strategy pick (perf review): keep the whole lookup resident in VMEM when
    # the fused block-diagonal table is small; otherwise row-gather Wv from HBM.
    v_all = WL + FL + FL2
    fused_bytes = v_all * D_pad * 4
    use_fused = (not force_hbm_gather) and v_all <= 1024 and fused_bytes <= (4 << 20)

    if use_fused:
        # Block-diagonal [Wv ⊕ pf1 ⊕ pf2] table, already padded to D_pad cols.
        tab = jnp.zeros((v_all, D_pad), jnp.float32)
        tab = tab.at[:WL, :WS].set(Wv.astype(jnp.float32))
        tab = tab.at[WL:WL + FL, WS:WS + FS].set(pf1.astype(jnp.float32))
        tab = tab.at[WL + FL:, WS + FS:WS + FS + FS2].set(pf2.astype(jnp.float32))
        idx3 = jnp.stack([x_idx, l_idx + WL, r_idx + WL + FL], axis=-1)

        est = (2 * tm * 3 * 4 + 2 * tm * D_pad * 4 + 2 * fused_bytes
               + tm * v_all * 4)
        out_flat = pl.pallas_call(
            _fused_kernel,
            out_shape=jax.ShapeDtypeStruct((n_pad, D_pad), jnp.float32),
            grid_spec=pltpu.PrefetchScalarGridSpec(
                num_scalar_prefetch=0,
                grid=grid,
                in_specs=[
                    pl.BlockSpec((tm, 3), lambda i: (i, 0)),          # indices
                    pl.BlockSpec((v_all, D_pad), lambda i: (0, 0)),   # resident
                ],
                out_specs=pl.BlockSpec((tm, D_pad), lambda i: (i, 0)),
            ),
            compiler_params=_compiler_params(est),
        )(idx3, tab)
    else:
        # Column-padded block-diagonal [pf1 ⊕ pf2] distance table: one matmul
        # emits the (tm, D_pad - WS) tail of the output row.
        lr_cols = D_pad - WS
        lr_tab = jnp.zeros((FL + FL2, lr_cols), jnp.float32)
        lr_tab = lr_tab.at[:FL, :FS].set(pf1.astype(jnp.float32))
        lr_tab = lr_tab.at[FL:, FS:FS + FS2].set(pf2.astype(jnp.float32))
        lr_idx = jnp.stack([l_idx, r_idx + FL], axis=-1)

        wv_itemsize = jnp.dtype(Wv.dtype).itemsize
        est = (2 * tm * 2 * 4 + 2 * tm * D_pad * 4
               + 2 * (FL + FL2) * lr_cols * 4 + 2 * tm * WS * wv_itemsize)
        # TODO(synk): for B*S beyond a few hundred thousand tokens the
        # scalar-prefetched x_idx (SMEM pads to next_pow2(4*n_pad) bytes) can
        # overflow SMEM; chunk the call or move x_idx to a per-tile SMEM block.
        out_flat = pl.pallas_call(
            _gather_kernel,
            out_shape=jax.ShapeDtypeStruct((n_pad, D_pad), jnp.float32),
            grid_spec=pltpu.PrefetchScalarGridSpec(
                num_scalar_prefetch=1,                                # x_idx
                grid=grid,
                in_specs=[
                    pl.BlockSpec((tm, 2), lambda i, xidx: (i, 0)),    # lr_idx
                    pl.BlockSpec(memory_space=pl.ANY),                # Wv in HBM
                    pl.BlockSpec((FL + FL2, lr_cols), lambda i, xidx: (0, 0)),
                ],
                out_specs=pl.BlockSpec((tm, D_pad), lambda i, xidx: (i, 0)),
                scratch_shapes=[
                    pltpu.VMEM((2, tm, WS), Wv.dtype),   # double-buffered rows
                    pltpu.SemaphoreType.DMA((2,)),       # one sem per slot
                ],
            ),
            compiler_params=_compiler_params(est),
        )(x_idx, lr_idx, Wv, lr_tab)

    # torch: concat(...).unsqueeze(1)
    return out_flat[:N, :D].reshape(B, S, D)[:, None, :, :]


def _reference(x, ldist, rdist, Wv, pf1, pf2):
    x_e = jnp.take(Wv, x, axis=0)
    l_e = jnp.take(pf1, ldist, axis=0)
    r_e = jnp.take(pf2, rdist, axis=0)
    return jnp.concatenate([x_e, l_e, r_e], axis=-1)[:, None, :, :]


if __name__ == "__main__":
    # Small, deterministic synthetic setup
    B, S = 2, 8
    word_length, word_size = 16, 32
    feature_length, feature_size = 10, 8

    key = jax.random.PRNGKey(0)
    k1, k2, k3, k4, k5, k6 = jax.random.split(key, 6)

    # Deterministic "checkpoint" weights (stand-ins for Wv / pf1 / pf2 arrays).
    # padding_idx=0 only affects gradients/init in PyTorch; forward is a plain
    # gather on the copied weights, reproduced here.
    Wv = jax.random.normal(k1, (word_length, word_size), dtype=jnp.float32)
    pf1 = jax.random.normal(k2, (feature_length, feature_size), dtype=jnp.float32)
    pf2 = jax.random.normal(k3, (feature_length, feature_size), dtype=jnp.float32)

    x = jax.random.randint(k4, (B, S), 0, word_length, dtype=jnp.int32)
    ldist = jax.random.randint(k5, (B, S), 0, feature_length, dtype=jnp.int32)
    rdist = jax.random.randint(k6, (B, S), 0, feature_length, dtype=jnp.int32)

    ref = _reference(x, ldist, rdist, Wv, pf1, pf2)

    # Fused / VMEM-resident path (default for small tables).  block_rows=8
    # -> 2 grid steps so the pipelined multi-step path is exercised.
    out_fused = jax.block_until_ready(
        get_embeddings(x, ldist, rdist, Wv, pf1, pf2, block_rows=8))
    assert out_fused.shape == (B, 1, S, word_size + 2 * feature_size), out_fused.shape
    assert jnp.allclose(out_fused, ref, atol=1e-5, rtol=1e-5), "fused path mismatch"

    # Large-vocab path (forced here): double-buffered HBM row gather.
    out_gather = jax.block_until_ready(
        get_embeddings(x, ldist, rdist, Wv, pf1, pf2, block_rows=8,
                       force_hbm_gather=True))
    assert jnp.allclose(out_gather, ref, atol=1e-5, rtol=1e-5), "gather path mismatch"

    print("KERNEL_OK")
</pallas_src>

<mosaic_0001>
module attributes {stable_mosaic.version = 11 : i64} {
  func.func @_fused_kernel(%arg0: i32, %arg1: memref<8x3xi32, #tpu.memory_space<vmem>>, %arg2: memref<36x128xf32, #tpu.memory_space<vmem>>, %arg3: memref<8x128xf32, #tpu.memory_space<vmem>>) attributes {dimension_semantics = [#tpu.dimension_semantics<parallel>], iteration_bounds = array<i64: 2>, scalar_prefetch = 0 : i64, scratch_operands = 0 : i64, tpu.core_type = #tpu.core_type<tc>, window_params = [{transform_indices = @transform_0, window_bounds = array<i64: 8, 3>}, {pipeline_mode = #tpu.pipeline_mode<synchronous>, transform_indices = @transform_1, window_bounds = array<i64: 36, 128>}, {transform_indices = @transform_2, window_bounds = array<i64: 8, 128>}]} {
    %c0 = arith.constant 0 : index
    %c0_0 = arith.constant 0 : index
    %0 = vector.load %arg1[%c0, %c0_0] : memref<8x3xi32, #tpu.memory_space<vmem>>, vector<8x3xi32>
    %1 = tpu.iota {dimensions = array<i32: 1>} : vector<8x36xi32>
    %2 = vector.extract_strided_slice %0 {offsets = [0, 0], sizes = [8, 1], strides = [1, 1]} : vector<8x3xi32> to vector<8x1xi32>
    %3 = vector.broadcast %2 : vector<8x1xi32> to vector<8x36xi32>
    %4 = arith.cmpi eq, %3, %1 : vector<8x36xi32>
    %5 = vector.extract_strided_slice %0 {offsets = [0, 1], sizes = [8, 1], strides = [1, 1]} : vector<8x3xi32> to vector<8x1xi32>
    %6 = vector.broadcast %5 : vector<8x1xi32> to vector<8x36xi32>
    %7 = arith.cmpi eq, %6, %1 : vector<8x36xi32>
    %8 = arith.ori %4, %7 : vector<8x36xi1>
    %9 = vector.extract_strided_slice %0 {offsets = [0, 2], sizes = [8, 1], strides = [1, 1]} : vector<8x3xi32> to vector<8x1xi32>
    %10 = vector.broadcast %9 : vector<8x1xi32> to vector<8x36xi32>
    %11 = arith.cmpi eq, %10, %1 : vector<8x36xi32>
    %12 = arith.ori %8, %11 : vector<8x36xi1>
    %13 = arith.extui %12 : vector<8x36xi1> to vector<8x36xi32>
    %14 = arith.sitofp %13 : vector<8x36xi32> to vector<8x36xf32>
    %c0_1 = arith.constant 0 : index
    %c0_2 = arith.constant 0 : index
    %15 = vector.load %arg2[%c0_1, %c0_2] : memref<36x128xf32, #tpu.memory_space<vmem>>, vector<36x128xf32>
    %cst = arith.constant dense<0.000000e+00> : vector<8x128xf32>
    %16 = tpu.matmul %14, %15, %cst {dimension_numbers = #tpu.dot_dimension_numbers<[1], [0], [0], [1], [0, 0, 1, 1], [], []>} : vector<8x36xf32>, vector<36x128xf32>, vector<8x128xf32> -> vector<8x128xf32>
    %c0_3 = arith.constant 0 : index
    %c0_4 = arith.constant 0 : index
    %17 = vector.load %arg3[%c0_3, %c0_4] : memref<8x128xf32, #tpu.memory_space<vmem>>, vector<8x128xf32>
    tpu.vector_store %arg3[%c0_3, %c0_4], %16 {strides = array<i32>} : memref<8x128xf32, #tpu.memory_space<vmem>>, vector<8x128xf32>,
    return
  }
  func.func @transform_0(%arg0: i32) -> (i32, i32) {
    %c0_i32 = arith.constant 0 : i32
    %c0_i32_0 = arith.constant 0 : i32
    return %arg0, %c0_i32 : i32, i32
  }
  func.func @transform_1(%arg0: i32) -> (i32, i32) {
    %c0_i32 = arith.constant 0 : i32
    %c0_i32_0 = arith.constant 0 : i32
    %c0_i32_1 = arith.constant 0 : i32
    return %c0_i32, %c0_i32_0 : i32, i32
  }
  func.func @transform_2(%arg0: i32) -> (i32, i32) {
    %c0_i32 = arith.constant 0 : i32
    %c0_i32_0 = arith.constant 0 : i32
    return %arg0, %c0_i32 : i32, i32
  }
}

</mosaic_0001>

<bundles_post_ra>
// kernel: get_embeddings.1
= control target key start
LH: loop header
LB: loop body
LE: loop exit
PB: predicated region body
PF: predicated region fallthrough
CT: control target
= control target key end

     0   :  { %s379_s9 = smov 0   ;;  %s418_s0 = inlined_call_operand.vmem [shape: s32[16,3], index: 0, kind: input, shape index: {}]   ;;  %s419_s1 = inlined_call_operand.vmem [shape: f32[36,128], index: 1, kind: input, shape index: {}]   ;;  %s420_s2 = inlined_call_operand.vmem [shape: f32[16,128], index: 2, kind: output, shape index: {}]  }
   0x1 LB: > { %s295_s10 = sadd.s32 4294967295, %s356_s9   ;;  %p299_p0 = scmp.ge.s32.totalorder %s356_s9, 1  ;;  %s356_s9 = sphi %s379_s9, %s12_s9  }
   0x2   : > { %p111_p1 = scmp.lt.s32.totalorder %s356_s9, 3 }
   0x4   : > { %p112_p2 = pnand %p299_p0, %p111_p1 }
   0x5   : > { %p131_p3 = scmp.lt.s32.totalorder (!%p112_p2), %s295_s10, 1  ;;  %v358_v0 = vmov (!%p112_p2), 0   ;;  %v359_v1 = vmov (!%p112_p2), 2   ;;  %v360_v2 = vmov (!%p112_p2), 0.0|0.0   ;;  %v158_v3 = vld [vmem:[%s419_s1] sm:$0xff] (!%p112_p2)  ;;  %v159_v4 = vld [vmem:[%s419_s1 + $0x8] sm:$0xff] (!%p112_p2)  ;;  %v140_v13 = vlaneseq (!%p112_p2) }
   0x6   : > { %115 = sbr.rel (%p112_p2) target bundleno = 367 (0x16f), region = 28  ;;  %346 = vset.pattern.permute.xlu0 (!%p112_p2), %v358_v0  ;;  %348 = vset.pattern.permute.xlu1 (!%p112_p2), %v359_v1  ;;  %v327_v5 = vpack.c.bf16 (!%p112_p2), %v159_v4, %v158_v3  ;;  %v160_v7 = vld [vmem:[%s419_s1 + $0x10] sm:$0xff] (!%p112_p2)  ;;  %v161_v8 = vld [vmem:[%s419_s1 + $0x18] sm:$0xff] (!%p112_p2)  ;;  %v361_v10 = vmov (!%p112_p2), 1   ;;  %v362_v11 = vmov (!%p112_p2), 0.0   ;;  %vm167_vm0 = vcmask (!%p112_p2), 1043456  }
   0x7   : > { %326 = vmatprep.subr.bf16.mxu0 (!%p112_p2), %v360_v2  ;;  %v330_v9 = vpack.c.bf16 (!%p112_p2), %v161_v8, %v160_v7  ;;  %v162_v12 = vld [vmem:[%s419_s1 + $0x20] sm:$0xf] (!%p112_p2)  ;;  %vm363_vm1 = vmmov (!%p112_p2), 0   ;;  %v141_v15 = vand.u32 (!%p112_p2), 127, %v140_v13  ;;  %vm163_vm6 = vcmask (!%p112_p2), 293888  }
   0x8   : > { %328 = vmatpush3.bf16.msra.mxu0 (!%p112_p2), %v327_v5  ;;  %323 = vmatprep.mubr.msk.f32.mxu0 (!%p112_p2), %vm363_vm1, %v362_v11 }
   0x9   : > { %329 = vmatprep.subr.bf16.mxu0 (!%p112_p2), %v360_v2 }
   0xc   : > { %331 = vmatpush3.bf16.msra.mxu0 (!%p112_p2), %v330_v9 }
   0xd   : > { %s422_s10 = smov (!%p131_p3, %s295_s10), 1  ;;  %321 = vmatprep.subr.mxu0 %v362_v11 }
   0xe   : > { %s300_s11 = sshll.u32 %s422_s10, 3 }
   0xf   : > { %s134_s18 = scalar_lea.vmem %s418_s0, %s300_s11  ;;  %s138_s27 = scalar_lea.vmem %s420_s2, %s300_s11 }
  0x10   : > { %v139_v6 = vld [vmem:[%s134_s18] sm:$0xff]  ;;  %322 = vmatpush3.msk.msra.mxu0 %vm167_vm0, %v162_v12 }
  0x11   : > { %143 = vperm.xlu0 %346, %v139_v6   ;;  %152 = vperm.xlu1 %348, %v139_v6  }
  0x15   : > { %347 = vset.pattern.permute.xlu0 %v361_v10 }
  0x16   : > { %147 = vperm.xlu0 %347, %v139_v6  }
  0x1a   : > { %349 = vset.pattern.permute.xlu0 %v359_v1 }
  0x90   : > { %v144_v14 = vpop.permute.xlu0 %143  ;;  %v153_v16 = vpop.permute.xlu1 %152 }
  0x91   : > { %vm154_vm2 = vcmp.eq.s32.totalorder %v153_v16, %v141_v15  ;;  %vm145_vm3 = vcmp.eq.s32.totalorder %v144_v14, %v141_v15 }
  0x95   : > { %v148_v17 = vpop.permute.xlu0 %147 }
  0x96   : > { %vm149_vm4 = vcmp.eq.s32.totalorder %v148_v17, %v141_v15 }
  0x97   : > { %vm150_vm5 = vmor %vm145_vm3, %vm149_vm4 }
  0x98   : > { %vm155_vm7 = vmor %vm150_vm5, %vm154_vm2 }
  0x99   : > { %v302_v18 = vsel %vm155_vm7, 1.0, %v362_v11 }
  0x9a   : > { %324 = vmatmul.mubr.msk.f32.vlgmr.msra.gmra.mrb[0].mxu0 %vm163_vm6, %v302_v18 }
 0x16d   : > { %v237_v19 = vpop.f32.mrb[0].mxu0 }
 0x16e   : > { %241 = vst [vmem:[%s138_s27] sm:$0xff] %v237_v19  ;;  %v325_v20 = vpop.f32.mrb[1].mxu0 }
 0x16f PF: > { %s12_s9 = sadd.s32 1, %s356_s9  }
 0x170   : > { %p9_p4 = scmp.ge.s32.totalorder %s12_s9, 4  }
 0x172   :  { %11 = sbr.rel (!%p9_p4) target bundleno = 1 (0x1), region = 58 }

</bundles_post_ra>
